<compile_context>
chip_gen: v6e
topology: v6e:2x2x1
jax: 0.10.0
libtpu: 0.0.40
codegen_flags: <defaults>
</compile_context>

<pallas_src>
import functools

import jax
import jax.numpy as jnp
from jax.experimental import pallas as pl
from jax.experimental.pallas import tpu as pltpu

EPS = 1e-5
LANE = 128
SUBLANE = 8


def _round_up(v, m):
    return (v + m - 1) // m * m


def _cdiv(a, b):
    return -(-a // b)


def _vmem_capacity_bytes():
    """Physical VMEM of the current chip; conservative fallback if unknown."""
    try:
        info = pltpu.get_tpu_info()
        cap = getattr(info, "vmem_capacity_bytes", None)
        if cap:
            return int(cap)
    except Exception:
        pass
    return 64 << 20  # conservative (v7x per-TC size)


def _default_tile_b():
    # Bigger batch tiles amortize per-grid-step overhead; 512 fits comfortably
    # on the 128 MiB parts (v5e/v6e), keep 256 within v7x's 64 MiB budget.
    return 512 if _vmem_capacity_bytes() >= (100 << 20) else 256


def _choose_batch_tile(B, tile_b):
    """Pick (tile_b, padded_B) that balances tiles and feeds both TCs."""
    n_tiles = max(1, _cdiv(B, tile_b))
    # v7x has 2 TensorCores sharing the "parallel" grid axis; make sure there
    # are >= 2 grid steps whenever there are enough rows to split.
    if n_tiles < 2 and B > SUBLANE:
        n_tiles = 2
    tb = _round_up(_cdiv(B, n_tiles), SUBLANE)
    bp = _round_up(B, tb)
    return tb, bp


def _linear_block_kernel(x_ref, w1_ref, w2_ref, aff_ref, o_ref, *,
                         inv_d: float, out_dim: int, dop: int,
                         is_residual: bool):
    """One batch tile of the fused 2-layer MLP + LayerNorms + ReLUs.

    x_ref:   (tile_b, Dip)  bf16   (zero-padded)
    w1_ref:  (Dip, Dop)     bf16   (zero-padded, single-buffered)
    w2_ref:  (Dop, Dop)     bf16   (zero-padded, single-buffered)
    aff_ref: (8, Dop)       f32    rows: 0=b1 1=g1 2=be1 3=b2 4=g2 5=be2
    o_ref:   (tile_b, Dop)
    """
    b1, g1, be1 = aff_ref[0:1, :], aff_ref[1:2, :], aff_ref[2:3, :]
    b2, g2, be2 = aff_ref[3:4, :], aff_ref[4:5, :], aff_ref[5:6, :]

    if dop != out_dim:
        lane = jax.lax.broadcasted_iota(jnp.int32, (1, dop), 1)
        feat_mask = lane < out_dim
    else:
        feat_mask = None

    def layer(inp_bf16, w_ref, b, g, be):
        # MXU matmul with bf16 inputs, f32 accumulation.
        h = jnp.dot(inp_bf16, w_ref[...],
                    preferred_element_type=jnp.float32) + b
        # Two-pass (centered) LayerNorm: better conditioned than E[x^2]-mu^2
        # for the unnormalized layer-1 input.  Padded lanes of h are exactly 0
        # (zero-padded W and b) so the mean over the real feature count is
        # exact; the centered values on padded lanes (= -mu) must be masked
        # out of the variance sum.
        mu = jnp.sum(h, axis=-1, keepdims=True) * inv_d
        c = h - mu
        if feat_mask is not None:
            c = jnp.where(feat_mask, c, 0.0)
        var = jnp.sum(c * c, axis=-1, keepdims=True) * inv_d
        h = c * jax.lax.rsqrt(var + EPS)
        h = h * g + be            # padded lanes: gamma = beta = 0 -> stay 0
        return jnp.maximum(h, 0.0)

    h1 = layer(x_ref[...], w1_ref, b1, g1, be1)
    out = layer(h1.astype(jnp.bfloat16), w2_ref, b2, g2, be2)

    if is_residual:               # only valid when in_dim == out_dim
        out = out + x_ref[...].astype(jnp.float32)

    o_ref[...] = out.astype(o_ref.dtype)


def prepare_params(params):
    """One-time host-side prep: pad weights to lane multiples, cast to bf16,
    and pack the six (1, out_dim) bias/gamma/beta vectors into one (8, dop)
    f32 block.  Call once and reuse across linear_block calls."""
    in_dim, out_dim = params["w1"].shape
    dip = _round_up(in_dim, LANE)
    dop = _round_up(out_dim, LANE)

    w1 = jnp.zeros((dip, dop), jnp.bfloat16).at[:in_dim, :out_dim].set(
        params["w1"].astype(jnp.bfloat16))
    w2 = jnp.zeros((dop, dop), jnp.bfloat16).at[:out_dim, :out_dim].set(
        params["w2"].astype(jnp.bfloat16))
    aff = jnp.zeros((SUBLANE, dop), jnp.float32)
    for r, name in enumerate(("b1", "g1", "be1", "b2", "g2", "be2")):
        aff = aff.at[r, :out_dim].set(
            params[name].reshape(-1).astype(jnp.float32))

    return {"w1p": w1, "w2p": w2, "aff": aff,
            "in_dim": in_dim, "out_dim": out_dim, "dip": dip, "dop": dop}


def linear_block(x, prep, *, is_residual: bool = False, tile_b: int = None):
    """x: (B, in_dim) float32.  prep: output of prepare_params()."""
    B, in_dim = x.shape
    assert in_dim == prep["in_dim"]
    out_dim, dip, dop = prep["out_dim"], prep["dip"], prep["dop"]
    if is_residual:
        assert in_dim == out_dim, "residual requires in_dim == out_dim"

    if tile_b is None:
        tile_b = _default_tile_b()
    tb, bp = _choose_batch_tile(B, tile_b)

    # Activations streamed in bf16 (halves HBM traffic in the mem-bound
    # regime); LN / accumulation stay f32 inside the kernel.
    if bp == B and dip == in_dim:
        xp = x.astype(jnp.bfloat16)
    else:
        xp = jnp.zeros((bp, dip), jnp.bfloat16).at[:B, :in_dim].set(
            x.astype(jnp.bfloat16))

    kernel = functools.partial(_linear_block_kernel,
                               inv_d=1.0 / float(out_dim),
                               out_dim=out_dim, dop=dop,
                               is_residual=is_residual)

    row = lambda i: (i, 0)      # x / out tiled along batch
    full = lambda i: (0, 0)     # weights / affine: grid-invariant block
    single = pl.Buffered(1)     # grid-invariant -> no second pipeline buffer

    grid_spec = pltpu.PrefetchScalarGridSpec(
        num_scalar_prefetch=0,
        grid=(bp // tb,),
        in_specs=[
            pl.BlockSpec((tb, dip), row),                              # x bf16
            pl.BlockSpec((dip, dop), full, pipeline_mode=single),      # w1
            pl.BlockSpec((dop, dop), full, pipeline_mode=single),      # w2
            pl.BlockSpec((SUBLANE, dop), full, pipeline_mode=single),  # affine
        ],
        out_specs=pl.BlockSpec((tb, dop), row),
    )

    # VMEM footprint: double-buffered bf16 x and out tiles, single-buffered
    # bf16 weights + affine, plus in-kernel f32 temporaries.
    out_bytes = jnp.dtype(x.dtype).itemsize
    est = (2 * tb * dip * 2                      # x tiles (bf16, 2 buffers)
           + 2 * tb * dop * out_bytes            # out tiles (2 buffers)
           + (dip * dop + dop * dop) * 2         # weights (bf16, 1 buffer)
           + SUBLANE * dop * 4                   # affine (1 buffer)
           + 6 * tb * dop * 4 + tb * dip * 4)    # f32 temporaries
    cap = int(_vmem_capacity_bytes() * 0.85)     # headroom for compiler scratch
    vmem_limit = int(min(max(2 * est, 32 << 20), cap))

    out = pl.pallas_call(
        kernel,
        out_shape=jax.ShapeDtypeStruct((bp, dop), x.dtype),
        grid_spec=grid_spec,
        compiler_params=pltpu.CompilerParams(
            dimension_semantics=("parallel",),
            vmem_limit_bytes=vmem_limit),
    )(xp, prep["w1p"], prep["w2p"], prep["aff"])

    if bp == B and dop == out_dim:   # no padding was added: skip the slice copy
        return out
    return out[:B, :out_dim]


def init_params(key, in_dim, out_dim):
    """Synthetic init: uniform(+-1/sqrt(fan_in)) linears, LayerNorm g=1, b=0."""
    k1, k2, k3, k4 = jax.random.split(key, 4)
    s1 = 1.0 / jnp.sqrt(in_dim)
    s2 = 1.0 / jnp.sqrt(out_dim)
    return {
        "w1": jax.random.uniform(k1, (in_dim, out_dim), jnp.float32, -s1, s1),
        "b1": jax.random.uniform(k2, (1, out_dim), jnp.float32, -s1, s1),
        "g1": jnp.ones((1, out_dim), jnp.float32),
        "be1": jnp.zeros((1, out_dim), jnp.float32),
        "w2": jax.random.uniform(k3, (out_dim, out_dim), jnp.float32, -s2, s2),
        "b2": jax.random.uniform(k4, (1, out_dim), jnp.float32, -s2, s2),
        "g2": jnp.ones((1, out_dim), jnp.float32),
        "be2": jnp.zeros((1, out_dim), jnp.float32),
    }


def _reference(x, p, is_residual):
    """Pure-JAX reference mirroring the kernel's bf16 streaming / f32 LN math."""
    xb = x.astype(jnp.bfloat16)

    def mm(a_bf16, w):
        return jnp.dot(a_bf16, w.astype(jnp.bfloat16),
                       preferred_element_type=jnp.float32)

    def ln(h, g, b):
        mu = jnp.mean(h, -1, keepdims=True)
        var = jnp.mean((h - mu) ** 2, -1, keepdims=True)
        return (h - mu) * jax.lax.rsqrt(var + EPS) * g + b

    h = jnp.maximum(ln(mm(xb, p["w1"]) + p["b1"], p["g1"], p["be1"]), 0.0)
    o = jnp.maximum(ln(mm(h.astype(jnp.bfloat16), p["w2"]) + p["b2"],
                       p["g2"], p["be2"]), 0.0)
    return o + xb.astype(jnp.float32) if is_residual else o


if __name__ == "__main__":
    key = jax.random.PRNGKey(0)
    kx, kp, kx2, kp2, kx3, kp3 = jax.random.split(key, 6)

    # Case 1: small square (32 -> 32), exercises feature padding 32 -> 128.
    B, in_dim, out_dim = 16, 32, 32
    x = jax.random.normal(kx, (B, in_dim), jnp.float32)
    params = init_params(kp, in_dim, out_dim)
    prep = prepare_params(params)
    out = jax.block_until_ready(linear_block(x, prep, is_residual=False))
    assert out.shape == (B, out_dim)
    assert jnp.allclose(out, _reference(x, params, False), atol=2e-3, rtol=2e-3)

    # Case 2: ragged batch / rectangular features (10, 24 -> 40): batch padding
    # plus independent in/out feature padding.
    B2, in2, out2 = 10, 24, 40
    x2 = jax.random.normal(kx2, (B2, in2), jnp.float32)
    params2 = init_params(kp2, in2, out2)
    prep2 = prepare_params(params2)
    out2_v = jax.block_until_ready(linear_block(x2, prep2, is_residual=False))
    assert out2_v.shape == (B2, out2)
    assert jnp.allclose(out2_v, _reference(x2, params2, False),
                        atol=2e-3, rtol=2e-3)

    # Case 3: lane-aligned residual (128 -> 128): no padding, no-slice fast
    # path, residual add, two grid steps on the parallel batch axis.
    B3, d3 = 16, 128
    x3 = jax.random.normal(kx3, (B3, d3), jnp.float32)
    params3 = init_params(kp3, d3, d3)
    prep3 = prepare_params(params3)
    out3_v = jax.block_until_ready(linear_block(x3, prep3, is_residual=True))
    assert out3_v.shape == (B3, d3)
    assert jnp.allclose(out3_v, _reference(x3, params3, True),
                        atol=2e-3, rtol=2e-3)

    print("KERNEL_OK")
</pallas_src>

<mosaic_0001>
module attributes {stable_mosaic.version = 11 : i64} {
  func.func @_linear_block_kernel(%arg0: i32, %arg1: memref<8x128xbf16, #tpu.memory_space<vmem>>, %arg2: memref<128x128xbf16, #tpu.memory_space<vmem>>, %arg3: memref<128x128xbf16, #tpu.memory_space<vmem>>, %arg4: memref<8x128xf32, #tpu.memory_space<vmem>>, %arg5: memref<8x128xf32, #tpu.memory_space<vmem>>) attributes {dimension_semantics = [#tpu.dimension_semantics<parallel>], iteration_bounds = array<i64: 2>, scalar_prefetch = 0 : i64, scratch_operands = 0 : i64, tpu.core_type = #tpu.core_type<tc>, window_params = [{transform_indices = @transform_0, window_bounds = array<i64: 8, 128>}, {pipeline_mode = #tpu.pipeline_mode<synchronous>, transform_indices = @transform_1, window_bounds = array<i64: 128, 128>}, {pipeline_mode = #tpu.pipeline_mode<synchronous>, transform_indices = @transform_2, window_bounds = array<i64: 128, 128>}, {pipeline_mode = #tpu.pipeline_mode<synchronous>, transform_indices = @transform_3, window_bounds = array<i64: 8, 128>}, {transform_indices = @transform_4, window_bounds = array<i64: 8, 128>}]} {
    %c0 = arith.constant 0 : index
    %c0_0 = arith.constant 0 : index
    %0 = vector.load %arg4[%c0, %c0_0] : memref<8x128xf32, #tpu.memory_space<vmem>>, vector<1x128xf32>
    %c1 = arith.constant 1 : index
    %c0_1 = arith.constant 0 : index
    %1 = vector.load %arg4[%c1, %c0_1] : memref<8x128xf32, #tpu.memory_space<vmem>>, vector<1x128xf32>
    %c2 = arith.constant 2 : index
    %c0_2 = arith.constant 0 : index
    %2 = vector.load %arg4[%c2, %c0_2] : memref<8x128xf32, #tpu.memory_space<vmem>>, vector<1x128xf32>
    %c3 = arith.constant 3 : index
    %c0_3 = arith.constant 0 : index
    %3 = vector.load %arg4[%c3, %c0_3] : memref<8x128xf32, #tpu.memory_space<vmem>>, vector<1x128xf32>
    %c4 = arith.constant 4 : index
    %c0_4 = arith.constant 0 : index
    %4 = vector.load %arg4[%c4, %c0_4] : memref<8x128xf32, #tpu.memory_space<vmem>>, vector<1x128xf32>
    %c5 = arith.constant 5 : index
    %c0_5 = arith.constant 0 : index
    %5 = vector.load %arg4[%c5, %c0_5] : memref<8x128xf32, #tpu.memory_space<vmem>>, vector<1x128xf32>
    %6 = tpu.iota {dimensions = array<i32: 1>} : vector<1x128xi32>
    %c32_i32 = arith.constant 32 : i32
    %7 = vector.broadcast %c32_i32 : i32 to vector<1x128xi32>
    %8 = arith.cmpi slt, %6, %7 : vector<1x128xi32>
    %c0_6 = arith.constant 0 : index
    %c0_7 = arith.constant 0 : index
    %9 = vector.load %arg1[%c0_6, %c0_7] : memref<8x128xbf16, #tpu.memory_space<vmem>>, vector<8x128xbf16>
    %c0_8 = arith.constant 0 : index
    %c0_9 = arith.constant 0 : index
    %10 = vector.load %arg2[%c0_8, %c0_9] : memref<128x128xbf16, #tpu.memory_space<vmem>>, vector<128x128xbf16>
    %cst = arith.constant dense<0.000000e+00> : vector<8x128xf32>
    %11 = tpu.matmul %9, %10, %cst {dimension_numbers = #tpu.dot_dimension_numbers<[1], [0], [0], [1], [0, 0, 1, 1], [], []>} : vector<8x128xbf16>, vector<128x128xbf16>, vector<8x128xf32> -> vector<8x128xf32>
    %12 = vector.broadcast %0 : vector<1x128xf32> to vector<8x128xf32>
    %13 = arith.addf %11, %12 : vector<8x128xf32>
    %cst_10 = arith.constant dense<0.000000e+00> : vector<8xf32>
    %14 = vector.multi_reduction <add>, %13, %cst_10 [1] : vector<8x128xf32> to vector<8xf32>
    %15 = vector.shape_cast %14 : vector<8xf32> to vector<8x1xf32>
    %cst_11 = arith.constant 3.125000e-02 : f32
    %16 = vector.broadcast %cst_11 : f32 to vector<8x1xf32>
    %17 = arith.mulf %15, %16 : vector<8x1xf32>
    %18 = vector.broadcast %17 : vector<8x1xf32> to vector<8x128xf32>
    %19 = arith.subf %13, %18 : vector<8x128xf32>
    %cst_12 = arith.constant 0.000000e+00 : f32
    %20 = vector.shape_cast %8 : vector<1x128xi1> to vector<1x128xi1>
    %21 = vector.broadcast %20 : vector<1x128xi1> to vector<8x128xi1>
    %22 = vector.broadcast %cst_12 : f32 to vector<8x128xf32>
    %23 = arith.select %21, %19, %22 : vector<8x128xi1>, vector<8x128xf32>
    %24 = arith.mulf %23, %23 : vector<8x128xf32>
    %cst_13 = arith.constant dense<0.000000e+00> : vector<8xf32>
    %25 = vector.multi_reduction <add>, %24, %cst_13 [1] : vector<8x128xf32> to vector<8xf32>
    %26 = vector.shape_cast %25 : vector<8xf32> to vector<8x1xf32>
    %cst_14 = arith.constant 3.125000e-02 : f32
    %27 = vector.broadcast %cst_14 : f32 to vector<8x1xf32>
    %28 = arith.mulf %26, %27 : vector<8x1xf32>
    %cst_15 = arith.constant 9.99999974E-6 : f32
    %29 = vector.broadcast %cst_15 : f32 to vector<8x1xf32>
    %30 = arith.addf %28, %29 : vector<8x1xf32>
    %31 = math.rsqrt %30 : vector<8x1xf32>
    %32 = vector.broadcast %31 : vector<8x1xf32> to vector<8x128xf32>
    %33 = arith.mulf %23, %32 : vector<8x128xf32>
    %34 = vector.broadcast %1 : vector<1x128xf32> to vector<8x128xf32>
    %35 = arith.mulf %33, %34 : vector<8x128xf32>
    %36 = vector.broadcast %2 : vector<1x128xf32> to vector<8x128xf32>
    %37 = arith.addf %35, %36 : vector<8x128xf32>
    %cst_16 = arith.constant 0.000000e+00 : f32
    %38 = vector.broadcast %cst_16 : f32 to vector<8x128xf32>
    %39 = arith.maximumf %37, %38 : vector<8x128xf32>
    %40 = arith.truncf %39 : vector<8x128xf32> to vector<8x128xbf16>
    %c0_17 = arith.constant 0 : index
    %c0_18 = arith.constant 0 : index
    %41 = vector.load %arg3[%c0_17, %c0_18] : memref<128x128xbf16, #tpu.memory_space<vmem>>, vector<128x128xbf16>
    %cst_19 = arith.constant dense<0.000000e+00> : vector<8x128xf32>
    %42 = tpu.matmul %40, %41, %cst_19 {dimension_numbers = #tpu.dot_dimension_numbers<[1], [0], [0], [1], [0, 0, 1, 1], [], []>} : vector<8x128xbf16>, vector<128x128xbf16>, vector<8x128xf32> -> vector<8x128xf32>
    %43 = vector.broadcast %3 : vector<1x128xf32> to vector<8x128xf32>
    %44 = arith.addf %42, %43 : vector<8x128xf32>
    %cst_20 = arith.constant dense<0.000000e+00> : vector<8xf32>
    %45 = vector.multi_reduction <add>, %44, %cst_20 [1] : vector<8x128xf32> to vector<8xf32>
    %46 = vector.shape_cast %45 : vector<8xf32> to vector<8x1xf32>
    %cst_21 = arith.constant 3.125000e-02 : f32
    %47 = vector.broadcast %cst_21 : f32 to vector<8x1xf32>
    %48 = arith.mulf %46, %47 : vector<8x1xf32>
    %49 = vector.broadcast %48 : vector<8x1xf32> to vector<8x128xf32>
    %50 = arith.subf %44, %49 : vector<8x128xf32>
    %cst_22 = arith.constant 0.000000e+00 : f32
    %51 = vector.shape_cast %8 : vector<1x128xi1> to vector<1x128xi1>
    %52 = vector.broadcast %51 : vector<1x128xi1> to vector<8x128xi1>
    %53 = vector.broadcast %cst_22 : f32 to vector<8x128xf32>
    %54 = arith.select %52, %50, %53 : vector<8x128xi1>, vector<8x128xf32>
    %55 = arith.mulf %54, %54 : vector<8x128xf32>
    %cst_23 = arith.constant dense<0.000000e+00> : vector<8xf32>
    %56 = vector.multi_reduction <add>, %55, %cst_23 [1] : vector<8x128xf32> to vector<8xf32>
    %57 = vector.shape_cast %56 : vector<8xf32> to vector<8x1xf32>
    %cst_24 = arith.constant 3.125000e-02 : f32
    %58 = vector.broadcast %cst_24 : f32 to vector<8x1xf32>
    %59 = arith.mulf %57, %58 : vector<8x1xf32>
    %cst_25 = arith.constant 9.99999974E-6 : f32
    %60 = vector.broadcast %cst_25 : f32 to vector<8x1xf32>
    %61 = arith.addf %59, %60 : vector<8x1xf32>
    %62 = math.rsqrt %61 : vector<8x1xf32>
    %63 = vector.broadcast %62 : vector<8x1xf32> to vector<8x128xf32>
    %64 = arith.mulf %54, %63 : vector<8x128xf32>
    %65 = vector.broadcast %4 : vector<1x128xf32> to vector<8x128xf32>
    %66 = arith.mulf %64, %65 : vector<8x128xf32>
    %67 = vector.broadcast %5 : vector<1x128xf32> to vector<8x128xf32>
    %68 = arith.addf %66, %67 : vector<8x128xf32>
    %cst_26 = arith.constant 0.000000e+00 : f32
    %69 = vector.broadcast %cst_26 : f32 to vector<8x128xf32>
    %70 = arith.maximumf %68, %69 : vector<8x128xf32>
    %c0_27 = arith.constant 0 : index
    %c0_28 = arith.constant 0 : index
    %71 = vector.load %arg5[%c0_27, %c0_28] : memref<8x128xf32, #tpu.memory_space<vmem>>, vector<8x128xf32>
    tpu.vector_store %arg5[%c0_27, %c0_28], %70 {strides = array<i32>} : memref<8x128xf32, #tpu.memory_space<vmem>>, vector<8x128xf32>,
    return
  }
  func.func @transform_0(%arg0: i32) -> (i32, i32) {
    %c0_i32 = arith.constant 0 : i32
    %c0_i32_0 = arith.constant 0 : i32
    return %arg0, %c0_i32 : i32, i32
  }
  func.func @transform_1(%arg0: i32) -> (i32, i32) {
    %c0_i32 = arith.constant 0 : i32
    %c0_i32_0 = arith.constant 0 : i32
    %c0_i32_1 = arith.constant 0 : i32
    return %c0_i32, %c0_i32_0 : i32, i32
  }
  func.func @transform_2(%arg0: i32) -> (i32, i32) {
    %c0_i32 = arith.constant 0 : i32
    %c0_i32_0 = arith.constant 0 : i32
    %c0_i32_1 = arith.constant 0 : i32
    return %c0_i32, %c0_i32_0 : i32, i32
  }
  func.func @transform_3(%arg0: i32) -> (i32, i32) {
    %c0_i32 = arith.constant 0 : i32
    %c0_i32_0 = arith.constant 0 : i32
    %c0_i32_1 = arith.constant 0 : i32
    return %c0_i32, %c0_i32_0 : i32, i32
  }
  func.func @transform_4(%arg0: i32) -> (i32, i32) {
    %c0_i32 = arith.constant 0 : i32
    %c0_i32_0 = arith.constant 0 : i32
    return %arg0, %c0_i32 : i32, i32
  }
}

</mosaic_0001>

<bundles_post_ra>
// kernel: tpu_custom_call.1
= control target key start
LH: loop header
LB: loop body
LE: loop exit
PB: predicated region body
PF: predicated region fallthrough
CT: control target
= control target key end

     0   :  { %9 = vsyncpa [#allocation3], 0  ;;  %s1259_s0 = inlined_call_operand.hbm [shape: bf16[16,128], index: 0, kind: input, shape index: {}]   ;;  %s1260_s1 = inlined_call_operand.hbm [shape: bf16[128,128], index: 1, kind: input, shape index: {}]   ;;  %s1261_s2 = inlined_call_operand.hbm [shape: bf16[128,128], index: 2, kind: input, shape index: {}]   ;;  %s1262_s3 = inlined_call_operand.hbm [shape: f32[8,128], index: 3, kind: input, shape index: {}]   ;;  %s1263_s4 = inlined_call_operand.hbm [shape: f32[16,128], index: 4, kind: output, shape index: {}]  }
   0x1   :  { %11 = vsyncpa [#allocation3 + $0x1], 0 }
   0x2   :  { %12 = vsyncpa [#allocation6], 0 }
   0x3   :  { %13 = vsyncpa [#allocation9], 0 }
   0x4   :  { %14 = vsyncpa [#allocation4], 0 }
   0x5   :  { %16 = vsyncpa [#allocation4 + $0x1], 0  ;;  %s1058_s15 = smov 0   ;;  %s1060_s16 = smov 0  }
   0x6   :  { %s1062_s17 = smov 0   ;;  %s1064_s18 = smov 0  }
   0x7 LB: > { %s1079_s19 = sadd.s32 4294967295, %s1022_s18   ;;  %s645_s20 = sadd.s32 4294967294, %s1022_s18   ;;  %s1022_s18 = sphi %s1064_s18, %s1287_s18   ;;  %s1018_s17 = sphi %s1062_s17, %s1286_s17   ;;  %s1014_s16 = sphi %s1060_s16, %s1285_s16   ;;  %s1010_s15 = sphi %s1058_s15, %s1284_s15  }
   0x8   : > { %p42_p0 = scmp.ne.s32.totalorder %s1014_s16, %s1010_s15  ;;  %p1264_p1 = scmp.eq.s32.totalorder %s1079_s19, 0 }
   0x9   : > { %p135_p3 = scmp.eq.s32.totalorder %s645_s20, 1  ;;  %p646_p5 = scmp.ge.s32.totalorder %s1022_s18, 1 }
   0xa   : > { %p1088_p4 = por %p1264_p1, %p42_p0  ;;  %p142_p7 = scmp.lt.s32.totalorder %s1022_s18, 3 }
   0xb   : > { %p1093_p6 = por %p135_p3, %p42_p0  ;;  %s1024_s24 = smov [#allocation5]  }
   0xc   : > { %s1268_s21 = scalar_select %p1088_p4, 1, 0 }
   0xd   : > { %s1269_s22 = scalar_select %p1093_p6, 1, 0 }
   0xe   : > { %p1098_p8 = pnand %p646_p5, %p142_p7  ;;  %s154_s25 = sshll.u32 %s1024_s24, 4  ;;  %s155_s25 = int_to_ptr.vmem [resolvable:$true] %s154_s25 }
   0xf   : > { %s1025_s27 = smov [#allocation7]   ;;  %s1026_s29 = smov [#allocation8]  }
  0x10   : > { %s1270_s23 = scalar_select %p1098_p8, 1, 0 }
  0x11   : > { %p759_p9 = pneg %p1098_p8  ;;  %s167_s28 = sshll.u32 %s1025_s27, 4  ;;  %s168_s28 = int_to_ptr.vmem [resolvable:$true] %s167_s28 }
  0x12   : > { %s181_s30 = sshll.u32 %s1026_s29, 4  ;;  %s855_s5 = scalar_lea.vmem %s155_s25, 1024  ;;  %s182_s30 = int_to_ptr.vmem [resolvable:$true] %s181_s30 }
  0x13   : > { %p1107_p11 = pnand %p759_p9, %p1264_p1  ;;  %p856_p13 = scmp.ne.s32.totalorder %s155_s25, %s855_s5 }
  0x14   : > { %p863_p5 = scmp.lt.s32.totalorder %s155_s25, %s155_s25  ;;  %p864_p7 = scmp.lt.s32.totalorder %s855_s5, %s855_s5 }
  0x15   : > { %p846_p12 = pneg %p1107_p11 }
  0x16   : > { %p865_p9 = por %p864_p7, %p863_p5 }
  0x17   : > { %p858_p0 = pnand %p856_p13, %p846_p12 }
  0x19   : > { %p859_p3 = pneg %p858_p0 }
  0x1b   : > { %p866_p10 = pnand %p865_p9, %p859_p3 }
  0x1d   : > { %869 = shalt.err (!%p866_p10)
}
  0x1e   : > { %s1027_s6 = smov 64   ;;  %s1028_s7 = smov 4  }
  0x1f   : > { %762 = dma.hbm_to_vmem [thread:$0]  (!%p1107_p11), %s1260_s1, 1024, %s155_s25, [#allocation6], %s1027_s6, %s1027_s6, %s1028_s7  }
  0x20   : > { %s881_s10 = scalar_lea.vmem %s168_s28, 1024  ;;  %p889_p2 = scmp.lt.s32.totalorder %s168_s28, %s168_s28 }
  0x21   : > { %p882_p1 = scmp.ne.s32.totalorder %s168_s28, %s881_s10  ;;  %p890_p6 = scmp.lt.s32.totalorder %s881_s10, %s881_s10 }
  0x23   : > { %p884_p13 = pnand %p882_p1, %p846_p12  ;;  %p891_p5 = por %p890_p6, %p889_p2 }
  0x25   : > { %p885_p0 = pneg %p884_p13 }
  0x27   : > { %p892_p3 = pnand %p891_p5, %p885_p0 }
  0x29   : > { %895 = shalt.err (!%p892_p3)
}
  0x2a   : > { %765 = dma.hbm_to_vmem [thread:$0]  (!%p1107_p11), %s1261_s2, 1024, %s168_s28, [#allocation6], %s1027_s6, %s1027_s6, %s1028_s7  }
  0x2b   : > { %s907_s13 = scalar_lea.vmem %s182_s30, 128  ;;  %p915_p9 = scmp.lt.s32.totalorder %s182_s30, %s182_s30 }
  0x2c   : > { %p908_p10 = scmp.ne.s32.totalorder %s182_s30, %s907_s13  ;;  %p916_p13 = scmp.lt.s32.totalorder %s907_s13, %s907_s13 }
  0x2e   : > { %p910_p7 = pnand %p908_p10, %p846_p12  ;;  %p917_p4 = por %p916_p13, %p915_p9 }
  0x30   : > { %p911_p1 = pneg %p910_p7 }
  0x32   : > { %p918_p2 = pnand %p917_p4, %p911_p1 }
  0x34   : > { %921 = shalt.err (!%p918_p2)
}
  0x35   : > { %768 = dma.hbm_to_vmem [thread:$0]  (!%p1107_p11), %s1262_s3, 128, %s182_s30, [#allocation9]  }
  0x36   : > { %s1138_s24 = sadd.s32 1, %s1022_s18   ;;  %s29_s26 = sadd.s32 1, %s1018_s17 }
  0x37   : > { %s26_s25 = ssub.s32 %s1022_s18, %s1138_s24  ;;  %p36_p6 = scmp.ne.s32.totalorder %s1018_s17, %s1014_s16 }
  0x38   : > { %p27_p4 = scmp.eq.s32.totalorder %s26_s25, 0  ;;  %p37_p12 = scmp.eq.s32.totalorder %s1022_s18, 0 }
  0x39   : > { %p780_p0 = scmp.lt.s32.totalorder %s1022_s18, 2  ;;  %p1272_p3 = scmp.eq.s32.totalorder %s1079_s19, 1 }
  0x3a   : > { %s1148_s27 = scalar_select %p27_p4, %s1018_s17, %s29_s26  }
  0x3b   : > { %p38_p5 = por %p37_p12, %p36_p6  ;;  %p1152_p10 = por %p1272_p3, %p36_p6 }
  0x3c   : > { %s192_s29 = sand.u32 1, %s1018_s17   ;;  %s652_s5 = sshll.u32 %s1022_s18, 6 }
  0x3d   : > { %s1273_s28 = scalar_select %p1152_p10, 1, 0 }
  0x3e   : > { %s651_s30 = sshll.u32 %s192_s29, 2  ;;  %s1161_s8 = scalar_lea.hbm %s1259_s0, %s652_s5 }
  0x3f   : > { %s196_s9 = scalar_lea.vmem [#allocation2], %s651_s30  ;;  %p1163_p11 = pnand %p780_p0, %p38_p5 }
  0x40   : > { %s203_s10 = sshll.u32 %s196_s9, 4  ;;  %s193_s12 = scalar_lea.sflag [#allocation3], %s192_s29  ;;  %s204_s10 = int_to_ptr.vmem [resolvable:$true] %s203_s10 }
  0x41   : > { %s922_s13 = scalar_lea.hbm %s1161_s8, 64  ;;  %p924_p1 = pneg %p1163_p11 }
  0x42   : > { %p923_p7 = scmp.ne.s32.totalorder %s1161_s8, %s922_s13  ;;  %s927_s25 = scalar_lea.hbm %s1259_s0, 128 }
  0x43   : > { %p928_p2 = scmp.lt.s32.totalorder %s1161_s8, %s1259_s0  ;;  %p929_p4 = scmp.lt.s32.totalorder %s927_s25, %s922_s13 }
  0x44   : > { %p925_p9 = pnand %p924_p1, %p923_p7 }
  0x45   : > { %p930_p6 = por %p929_p4, %p928_p2 }
  0x46   : > { %p926_p13 = pneg %p925_p9 }
  0x48   : > { %p931_p12 = pnand %p930_p6, %p926_p13 }
  0x4a   : > { %934 = shalt.err (!%p931_p12)
}
  0x4b   : > { %s935_s30 = scalar_lea.vmem %s204_s10, 64  ;;  %s1029_s29 = smov [#allocation2]  }
  0x4c   : > { %p936_p0 = scmp.ne.s32.totalorder %s204_s10, %s935_s30  ;;  %s940_s6 = sshll.u32 %s1029_s29, 4  ;;  %s941_s6 = int_to_ptr.vmem [resolvable:$false] %s940_s6 }
  0x4d   : > { %s942_s7 = scalar_lea.vmem %s941_s6, 128  ;;  %p943_p7 = scmp.lt.s32.totalorder %s204_s10, %s941_s6 }
  0x4e   : > { %p938_p5 = pnand %p936_p0, %p924_p1  ;;  %p944_p9 = scmp.lt.s32.totalorder %s942_s7, %s935_s30 }
  0x50   : > { %p939_p3 = pneg %p938_p5  ;;  %p945_p10 = por %p944_p9, %p943_p7 }
  0x52   : > { %p946_p8 = pnand %p945_p10, %p939_p3 }
  0x54   : > { %949 = shalt.err (!%p946_p8)
}
  0x55   : > { %772 = dma.hbm_to_vmem [thread:$0]  (!%p1163_p11), %s1161_s8, 64, %s204_s10, %s193_s12  }
  0x56   : > { %p1275_p13 = scmp.ne.s32.totalorder %s1270_s23, 0 }
  0x57   : > { %s1184_s9 = sand.u32 (!%p1275_p13), 1, %s1014_s16   ;;  %p1276_p1 = scmp.ne.s32.totalorder (!%p1275_p13), %s1268_s21, 0 }
  0x58   : > { %212 = sbr.rel (%p1275_p13) target bundleno = 1157 (0x485), region = 36  ;;  %s654_s13 = sshll.u32 (!%p1275_p13), %s1184_s9, 2 }
  0x59   : > { %s215_s14 = scalar_lea.sflag (!%p1275_p13), [#allocation3], %s1184_s9  ;;  %s1188_s20 = scalar_lea.vmem (!%p1275_p13), [#allocation2], %s654_s13 }
  0x5d   : > { %993 = dma.done.wait (%p1276_p1), %s215_s14, 64  }
  0x5e   : > { %995 = vsyncadd (%p1276_p1), %s215_s14, 4294967232  ;;  %p1277_p8 = scmp.eq.s32.totalorder %s1079_s19, 0 }
  0x60   : > { %997 = dma.done.wait (%p1277_p8), [#allocation6], 2048   ;;  %p1278_p10 = pmov %p1277_p8 }
  0x61   : > { %p1279_p11 = pmov %p1277_p8 }
  0x62   : > { %999 = vsyncadd (%p1278_p10), [#allocation6], 4294965248 }
  0x63   : > { %1001 = dma.done.wait (%p1279_p11), [#allocation9], 128   ;;  %p1280_p2 = pmov %p1277_p8 }
  0x64   : > { %v1030_v0 = vmov 0.0   ;;  %vm1031_vm0 = vmmov 0   ;;  %v824_v1 = vld [vmem:[#allocation5 + $0x38] sm:$0xff]   ;;  %v825_v2 = vld [vmem:[#allocation5 + $0x30] sm:$0xff]   ;;  %v826_v3 = vld [vmem:[#allocation5 + $0x28] sm:$0xff]   ;;  %v262_v17 = vlaneseq  ;;  %s658_s21 = sshll.u32 %s1184_s9, 3 }
  0x65   : > { %1003 = vsyncadd (%p1280_p2), [#allocation9], 4294967168  ;;  %703 = vmatprep.subr.bf16.mxu0 %v1030_v0  ;;  %719 = vmatprep.mubr.msk.bf16.mxu0 %vm1031_vm0, %v1030_v0  ;;  %v827_v4 = vld [vmem:[#allocation5 + $0x20] sm:$0xff]   ;;  %v828_v5 = vld [vmem:[#allocation5 + $0x18] sm:$0xff]   ;;  %s682_s23 = sshll.u32 %s1079_s19, 7  ;;  %s254_s8 = scalar_lea.vmem [#allocation10], %s658_s21 }
  0x66   : > { %723 = vmatprep.subr.bf16.mxu1 %v1030_v0  ;;  %739 = vmatprep.mubr.msk.bf16.mxu1 %vm1031_vm0, %v1030_v0  ;;  %v829_v6 = vld [vmem:[#allocation5 + $0x10] sm:$0xff]   ;;  %v830_v7 = vld [vmem:[#allocation5 + $0x8] sm:$0xff]   ;;  %v831_v8 = vld [vmem:[#allocation5] sm:$0xff]   ;;  %v263_v18 = vand.u32 127, %v262_v17  ;;  %s546_s10 = sshll.u32 %s254_s8, 4  ;;  %s544_s25 = scalar_lea.hbm %s1263_s4, %s682_s23  ;;  %s547_s10 = int_to_ptr.vmem [resolvable:$true] %s546_s10 }
  0x67   : > { %704 = vmatpush3.bf16.msra.mxu0 %v824_v1  ;;  %v265_v9 = vld [vmem:[%s1188_s20] sm:$0xf]  ;;  %v659_v10 = vld [vmem:[#allocation8] ss:$0 sm:$0xff]  ;;  %v833_v24 = vld [vmem:[#allocation7 + $0x30] sm:$0xff]   ;;  %s533_s26 = scalar_lea.sflag [#allocation4], %s1184_s9 }
  0x68   : > { %705 = vmatprep.subr.bf16.mxu0 %v1030_v0  ;;  %v832_v16 = vld [vmem:[#allocation7 + $0x38] sm:$0xff]   ;;  %vm264_vm1 = vcmp.lt.s32.totalorder %v263_v18, 32  ;;  %v834_v25 = vld [vmem:[#allocation7 + $0x28] sm:$0xff]   ;;  %v835_v26 = vld [vmem:[#allocation7 + $0x20] sm:$0xff]   ;;  %s950_s5 = scalar_lea.vmem %s547_s10, 128  ;;  %p1281_p6 = scmp.ne.s32.totalorder %s1273_s28, 0 }
  0x69   : > { %724 = vmatpush3.bf16.msra.mxu1 %v832_v16  ;;  %v836_v27 = vld [vmem:[#allocation7 + $0x18] sm:$0xff]   ;;  %v837_v28 = vld [vmem:[#allocation7 + $0x10] sm:$0xff]   ;;  %v838_v29 = vld [vmem:[#allocation7 + $0x8] sm:$0xff]   ;;  %p951_p4 = scmp.ne.s32.totalorder %s547_s10, %s950_s5  ;;  %s1032_s30 = smov [#allocation10]  }
  0x6a   : > { %725 = vmatprep.subr.bf16.mxu1 %v1030_v0  ;;  %v839_v30 = vld [vmem:[#allocation7] sm:$0xff]   ;;  %s954_s29 = sshll.u32 %s1032_s30, 4  ;;  %s955_s29 = int_to_ptr.vmem [resolvable:$false] %s954_s29 }
  0x6b   : > { %706 = vmatpush3.bf16.msra.mxu0 %v825_v2  ;;  %v668_v35 = vld [vmem:[#allocation8 + $0x1] ss:$0 sm:$0xff]  ;;  %v669_v37 = vld [vmem:[#allocation8 + $0x2] ss:$0 sm:$0xff]  ;;  %v670_v42 = vld [vmem:[#allocation8 + $0x3] ss:$0 sm:$0xff]  ;;  %p952_p12 = pnand %p951_p4, %p1281_p6  ;;  %p957_p5 = scmp.lt.s32.totalorder %s547_s10, %s955_s29 }
  0x6c   : > { %707 = vmatprep.subr.bf16.mxu0 %v1030_v0  ;;  %v679_v57 = vld [vmem:[#allocation8 + $0x4] ss:$0 sm:$0xff]  ;;  %v680_v59 = vld [vmem:[#allocation8 + $0x5] ss:$0 sm:$0xff]  ;;  %s956_s19 = scalar_lea.vmem %s955_s29, 256 }
  0x6d   : > { %726 = vmatpush3.bf16.msra.mxu1 %v833_v24  ;;  %p953_p0 = pneg %p952_p12  ;;  %p958_p3 = scmp.lt.s32.totalorder %s956_s19, %s950_s5 }
  0x6e   : > { %727 = vmatprep.subr.bf16.mxu1 %v1030_v0 }
  0x6f   : > { %708 = vmatpush3.bf16.msra.mxu0 %v826_v3  ;;  %p959_p7 = por %p958_p3, %p957_p5 }
  0x70   : > { %709 = vmatprep.subr.bf16.mxu0 %v1030_v0 }
  0x71   : > { %728 = vmatpush3.bf16.msra.mxu1 %v834_v25  ;;  %p960_p9 = pnand %p959_p7, %p953_p0 }
  0x72   : > { %729 = vmatprep.subr.bf16.mxu1 %v1030_v0 }
  0x73   : > { %710 = vmatpush3.bf16.msra.mxu0 %v827_v4 }
  0x74   : > { %711 = vmatprep.subr.bf16.mxu0 %v1030_v0 }
  0x75   : > { %730 = vmatpush3.bf16.msra.mxu1 %v835_v26 }
  0x76   : > { %731 = vmatprep.subr.bf16.mxu1 %v1030_v0 }
  0x77   : > { %712 = vmatpush3.bf16.msra.mxu0 %v828_v5 }
  0x78   : > { %713 = vmatprep.subr.bf16.mxu0 %v1030_v0 }
  0x79   : > { %732 = vmatpush3.bf16.msra.mxu1 %v836_v27 }
  0x7a   : > { %733 = vmatprep.subr.bf16.mxu1 %v1030_v0 }
  0x7b   : > { %714 = vmatpush3.bf16.msra.mxu0 %v829_v6 }
  0x7c   : > { %715 = vmatprep.subr.bf16.mxu0 %v1030_v0 }
  0x7d   : > { %734 = vmatpush3.bf16.msra.mxu1 %v837_v28 }
  0x7e   : > { %735 = vmatprep.subr.bf16.mxu1 %v1030_v0 }
  0x7f   : > { %716 = vmatpush3.bf16.msra.mxu0 %v830_v7 }
  0x80   : > { %717 = vmatprep.subr.bf16.mxu0 %v1030_v0 }
  0x81   : > { %736 = vmatpush3.bf16.msra.mxu1 %v838_v29 }
  0x82   : > { %737 = vmatprep.subr.bf16.mxu1 %v1030_v0 }
  0x83   : > { %718 = vmatpush3.bf16.msra.mxu0 %v831_v8 }
  0x85   : > { %738 = vmatpush3.bf16.msra.mxu1 %v839_v30 }
  0x86   : > { %720 = vmatmul.mubr.bf16.vlgmr.msra.gmra.mxu0 %v265_v9 }
 0x146   : > { %v368_v11 = vpop.f32.mrf.mxu0 }
 0x147   : > { %v369_v12 = vadd.f32 %v659_v10, %v368_v11 }
 0x148   : > { %v721_v13 = vpop.f32.mrf.mxu0 }
 0x149   : > { %374 = vadd.xlane.f32.xlu0 %v369_v12 }
 0x14a   : > { %v371_v14 = vpop.f32.mrf.mxu0 }
 0x14c   : > { %v722_v15 = vpop.f32.mrf.mxu0 }
 0x1d2   : > { %v375_v19 = vpop.xlane.xlu0 %374 }
 0x1d3   : > { %v376_v20 = vmul.f32 0.03125, %v375_v19 }
 0x1d5   : > { %v377_v21 = vsub.f32 %v369_v12, %v376_v20 }
 0x1d7   : > { %v380_v22 = vsel %vm264_vm1, %v377_v21, 0.0 }
 0x1d8   : > { %v381_v23 = vmul.f32 %v380_v22, %v380_v22 }
 0x1da   : > { %382 = vadd.xlane.f32.xlu0 %v381_v23 }
 0x263   : > { %v383_v31 = vpop.xlane.xlu0 %382 }
 0x264   : > { %v384_v32 = vmul.f32 0.03125, %v383_v31 }
 0x266   : > { %v385_v33 = vadd.f32 1e-05, %v384_v32 }
 0x268   : > { %840 = vrsqrt.f32 %v385_v33 }
 0x275   : > { %v841_v34 = vpop.eup %840 }
 0x276   : > { %v387_v36 = vmul.f32 %v841_v34, %v380_v22 }
 0x278   : > { %v392_v38 = vmul.f32 %v668_v35, %v387_v36 }
 0x27a   : > { %v397_v39 = vadd.f32 %v669_v37, %v392_v38 }
 0x27c   : > { %v398_v40 = vmax.f32 %v397_v39, 0.0 }
 0x27e   : > { %v399_v41 = vpack.c.bf16 %v398_v40, %v398_v40 }
 0x280   : > { %740 = vmatmul.mubr.bf16.vlgmr.msra.gmra.mxu1 %v399_v41 }
 0x340   : > { %v502_v43 = vpop.f32.mrf.mxu1 }
 0x341   : > { %v503_v44 = vadd.f32 %v670_v42, %v502_v43 }
 0x342   : > { %v741_v45 = vpop.f32.mrf.mxu1 }
 0x343   : > { %508 = vadd.xlane.f32.xlu1 %v503_v44 }
 0x344   : > { %v505_v46 = vpop.f32.mrf.mxu1 }
 0x346   : > { %v742_v47 = vpop.f32.mrf.mxu1 }
 0x3cc   : > { %v509_v48 = vpop.xlane.xlu1 %508 }
 0x3cd   : > { %v510_v49 = vmul.f32 0.03125, %v509_v48 }
 0x3cf   : > { %v511_v50 = vsub.f32 %v503_v44, %v510_v49 }
 0x3d1   : > { %v512_v51 = vsel %vm264_vm1, %v511_v50, 0.0 }
 0x3d2   : > { %v513_v52 = vmul.f32 %v512_v51, %v512_v51 }
 0x3d4   : > { %514 = vadd.xlane.f32.xlu1 %v513_v52 }
 0x45d   : > { %v515_v53 = vpop.xlane.xlu1 %514 }
 0x45e   : > { %v516_v54 = vmul.f32 0.03125, %v515_v53 }
 0x460   : > { %v517_v55 = vadd.f32 1e-05, %v516_v54 }
 0x462   : > { %842 = vrsqrt.f32 %v517_v55 }
 0x46f   : > { %v843_v56 = vpop.eup %842 }
 0x470   : > { %v519_v58 = vmul.f32 %v843_v56, %v512_v51 }
 0x472   : > { %v524_v60 = vmul.f32 %v679_v57, %v519_v58 }
 0x474   : > { %v529_v61 = vadd.f32 %v680_v59, %v524_v60 }
 0x476   : > { %v530_v62 = vmax.f32 %v529_v61, 0.0 }
 0x478   : > { %531 = vst [vmem:[%s254_s8] sm:$0xff] %v530_v62 }
 0x479   : > { %963 = shalt.err (!%p960_p9)
}
 0x47a   : > { %s964_s6 = scalar_lea.hbm %s544_s25, 128  ;;  %s968_s13 = scalar_lea.hbm %s1263_s4, 256 }
 0x47b   : > { %p965_p13 = scmp.ne.s32.totalorder %s544_s25, %s964_s6  ;;  %p969_p10 = scmp.lt.s32.totalorder %s544_s25, %s1263_s4 }
 0x47c   : > { %p970_p11 = scmp.lt.s32.totalorder %s968_s13, %s964_s6 }
 0x47d   : > { %p966_p1 = pnand %p965_p13, %p1281_p6 }
 0x47e   : > { %p971_p2 = por %p970_p11, %p969_p10 }
 0x47f   : > { %p967_p8 = pneg %p966_p1 }
 0x481   : > { %p972_p4 = pnand %p971_p2, %p967_p8 }
 0x483   : > { %975 = shalt.err (!%p972_p4)
}
 0x484   : > { %757 = dma.vmem_to_hbm [thread:$0]  (%p1281_p6), %s547_s10, 128, %s544_s25, %s533_s26  }
 0x485 PF: > { %s558_s21 = sand.u32 1, %s1010_s15   ;;  %p1282_p12 = scmp.ne.s32.totalorder %s1269_s22, 0 }
 0x486   : > { %p1283_p0 = scmp.ge.s32.totalorder %s1022_s18, 2  ;;  %s559_s23 = scalar_lea.sflag [#allocation4], %s558_s21 }
 0x488   : > { %p774_p5 = pnand %p1283_p0, %p1282_p12 }
 0x48a   : > { %p775_p3 = pneg %p774_p5 }
 0x48c   : > { %1005 = dma.done.wait (%p775_p3), %s559_s23, 128  }
 0x48d   : > { %1007 = vsyncadd (%p775_p3), %s559_s23, 4294967168  ;;  %p19_p7 = scmp.ge.s32.totalorder %s1138_s24, 4   ;;  %s1284_s15 = smov %s1014_s16 }
 0x48e   : > { %s1285_s16 = smov %s1018_s17  ;;  %s1286_s17 = smov %s1148_s27 }
 0x48f   : > { %s1287_s18 = smov %s1138_s24  ;;  %21 = sbr.rel (!%p19_p7) target bundleno = 7 (0x7), region = 93 }
 0x494   :  { %564 = vsyncpa [#allocation3], 1 }
 0x495   :  { %566 = vsyncpa [#allocation3 + $0x1], 1 }
 0x496   :  { %567 = vsyncpa [#allocation6], 1 }
 0x497   :  { %568 = vsyncpa [#allocation9], 1 }
 0x498   :  { %569 = vsyncpa [#allocation4], 1 }
 0x499   :  { %571 = vsyncpa [#allocation4 + $0x1], 1 }

</bundles_post_ra>
